<compile_context>
chip_gen: v7x
topology: tpu7x:2x2x1
jax: 0.10.0
libtpu: 0.0.40
codegen_flags: <defaults>
</compile_context>

<pallas_src>
import functools

import jax
import jax.numpy as jnp
from jax.experimental import pallas as pl
from jax.experimental.pallas import tpu as pltpu


def _se_kernel(*refs, use_mxu, c, fold, hw_total, tail_rem):
    """Grid: (N, hw_blocks). acc_ref (8, fold*c) f32 persists across the
    spatial reduction axis; row 0 holds the running channel sums."""
    if use_mxu:
        x_ref, ones_ref, w1_ref, b1_ref, w2_ref, b2_ref, o_ref, acc_ref = refs
    else:
        x_ref, w1_ref, b1_ref, w2_ref, b2_ref, o_ref, acc_ref = refs
        ones_ref = None

    k = pl.program_id(1)
    last = pl.num_programs(1) - 1

    @pl.when(k == 0)
    def _init():
        acc_ref[...] = jnp.zeros_like(acc_ref)

    def _accumulate(x2d):
        if use_mxu:
            # Spatial reduce on the idle MXU: (8, S) @ (S, C_eff) -> (8, C_eff)
            # with f32 accumulation (exact for bf16 inputs).
            acc_ref[...] += jnp.dot(ones_ref[...], x2d,
                                    preferred_element_type=jnp.float32)
        else:
            # f32 / generic path: exact VPU reduce (broadcast-add keeps the
            # store unmasked; row 0 is the meaningful one).
            acc_ref[...] += jnp.sum(x2d.astype(jnp.float32), axis=0,
                                    keepdims=True)

    if tail_rem is None:
        _accumulate(x_ref[0])
    else:
        # Only the final spatial block pays for masking its OOB-padded rows.
        @pl.when(k != last)
        def _interior():
            _accumulate(x_ref[0])

        @pl.when(k == last)
        def _tail():
            x2d = x_ref[0]
            row = jax.lax.broadcasted_iota(jnp.int32, x2d.shape, 0)
            _accumulate(jnp.where(row < tail_rem, x2d, jnp.zeros_like(x2d)))

    @pl.when(k == last)
    def _finalize():
        acc0 = acc_ref[0:1, :]                       # (1, fold*c) f32
        pooled = acc0[:, 0:c]
        for j in range(1, fold):                     # undo the lane fold
            pooled = pooled + acc0[:, j * c:(j + 1) * c]
        pooled = pooled * (1.0 / float(hw_total))    # (1, c) mean
        # 1x1 conv #1 == matmul + bias + ReLU
        h = jnp.dot(pooled, w1_ref[...], preferred_element_type=jnp.float32)
        h = jnp.maximum(h + b1_ref[...], 0.0)        # (1, hidden)
        # 1x1 conv #2 == matmul + bias + Sigmoid
        y = jnp.dot(h, w2_ref[...], preferred_element_type=jnp.float32)
        o_ref[0] = jax.nn.sigmoid(y + b2_ref[...]).astype(o_ref.dtype)


def _vmem_capacity_bytes():
    try:
        return int(pltpu.get_tpu_info().vmem_capacity_bytes)
    except Exception:
        return 64 * 1024 * 1024          # conservative (v7x physical VMEM)


def _pick_tile_rows(hw_rows, c_eff, itemsize, use_mxu, vmem_budget_bytes):
    """Largest spatial tile (multiple of 8 rows) that keeps 2 pipeline buffers
    (+ the resident ones operand on the MXU path) inside the VMEM budget,
    capped at 16 MiB per buffer (12-16 MiB amortizes the ~0.35us/step tax)."""
    reserve = 4 << 20                                 # params / acc / headroom
    per_buf = max(1 << 20, (vmem_budget_bytes - reserve) // 2)
    if use_mxu:
        per_buf = int(per_buf / (1.0 + 8.0 / c_eff))  # ones operand overhead
    per_buf = min(per_buf, 16 << 20)
    rows = per_buf // (c_eff * itemsize)
    if rows >= hw_rows:
        return hw_rows                                # whole spatial extent fits
    return max(8, int(rows) // 8 * 8)


def se_module_forward_nhwc(x, w1, b1, w2, b2, *, tile_hw=None):
    """x: (N, H*W, C) channels-last (f32 or bf16).
    w1: (hidden, C), b1: (hidden,), w2: (out_dim, hidden), b2: (out_dim,)
    (PyTorch 1x1-Conv2d weight layout, squeezed). Returns (N, out_dim), x.dtype."""
    N, HW, C = x.shape
    hidden = w1.shape[0]
    out_dim = w2.shape[0]
    itemsize = x.dtype.itemsize

    # Lane packing for small C (free view reshape on the contiguous NHWC array).
    fold = 1
    if C < 128 and 128 % C == 0 and HW % (128 // C) == 0:
        fold = 128 // C
    c_eff = C * fold
    hw_rows = HW // fold
    x_r = x.reshape(N, hw_rows, c_eff)

    use_mxu = (x.dtype == jnp.bfloat16)   # bf16 stream -> pooling on the MXU

    vmem_cap = _vmem_capacity_bytes()
    vmem_budget = int(0.70 * vmem_cap)

    if tile_hw is None:
        tile_hw = _pick_tile_rows(hw_rows, c_eff, itemsize, use_mxu, vmem_budget)
    if tile_hw >= hw_rows:
        tile_hw = hw_rows
    else:
        tile_hw = max(8, (int(tile_hw) // 8) * 8)
    hw_blocks = pl.cdiv(hw_rows, tile_hw)
    rem = hw_rows - (hw_blocks - 1) * tile_hw
    tail_rem = None if rem == tile_hw else rem

    # Tiny parameter glue (negligible vs. the activation stream).
    w1_t = jnp.transpose(w1).astype(jnp.float32)      # (C, hidden)
    w2_t = jnp.transpose(w2).astype(jnp.float32)      # (hidden, out_dim)
    b1_r = b1.reshape(1, hidden).astype(jnp.float32)
    b2_r = b2.reshape(1, out_dim).astype(jnp.float32)

    kernel = functools.partial(_se_kernel, use_mxu=use_mxu, c=C, fold=fold,
                               hw_total=HW, tail_rem=tail_rem)

    inputs = [x_r]
    in_specs = [pl.BlockSpec((1, tile_hw, c_eff), lambda i, k: (i, k, 0))]
    if use_mxu:
        inputs.append(jnp.ones((8, tile_hw), dtype=x.dtype))        # resident
        in_specs.append(pl.BlockSpec((8, tile_hw), lambda i, k: (0, 0)))
    inputs += [w1_t, b1_r, w2_t, b2_r]
    in_specs += [
        pl.BlockSpec((C, hidden), lambda i, k: (0, 0)),             # resident w1
        pl.BlockSpec((1, hidden), lambda i, k: (0, 0)),             # resident b1
        pl.BlockSpec((hidden, out_dim), lambda i, k: (0, 0)),       # resident w2
        pl.BlockSpec((1, out_dim), lambda i, k: (0, 0)),            # resident b2
    ]

    # Generation-aware VMEM request: actual need, capped at 0.75x physical.
    x_block_bytes = tile_hw * c_eff * itemsize
    ones_bytes = 8 * tile_hw * itemsize if use_mxu else 0
    param_bytes = (C * hidden + hidden + hidden * out_dim + out_dim) * 4
    need = (2 * x_block_bytes + 2 * ones_bytes + param_bytes
            + 8 * c_eff * 4 + 2 * out_dim * itemsize + (4 << 20))
    vmem_limit = int(min(max(need, 32 << 20), 0.75 * vmem_cap))

    grid_spec = pltpu.PrefetchScalarGridSpec(
        num_scalar_prefetch=0,
        grid=(N, hw_blocks),
        in_specs=in_specs,
        out_specs=pl.BlockSpec((1, 1, out_dim), lambda i, k: (i, 0, 0)),
        scratch_shapes=[pltpu.VMEM((8, c_eff), jnp.float32)],
    )

    # TODO(synk): when N == 1 on v7x, split the spatial reduction across the two
    # TensorCores (core-parallel partial accumulators + tiny combine epilogue).
    out = pl.pallas_call(
        kernel,
        out_shape=jax.ShapeDtypeStruct((N, 1, out_dim), x.dtype),
        grid_spec=grid_spec,
        compiler_params=pltpu.CompilerParams(
            dimension_semantics=("parallel", "arbitrary"),
            vmem_limit_bytes=vmem_limit,
        ),
    )(*inputs)
    return out.reshape(N, out_dim)


def se_module_forward(x_nchw, w1, b1, w2, b2, *, tile_hw=None):
    """NCHW convenience wrapper matching the PyTorch module; returns
    (N, out_dim, 1, 1) in x.dtype."""
    # TODO(synk): add an NCHW-native streaming variant (reduce over the lane/HW
    # dim via an MXU ones-matmul) so NCHW callers skip this transpose's extra
    # HBM read+write of the activation tensor.
    N, C, H, W = x_nchw.shape
    x_flat = jnp.transpose(x_nchw, (0, 2, 3, 1)).reshape(N, H * W, C)
    out = se_module_forward_nhwc(x_flat, w1, b1, w2, b2, tile_hw=tile_hw)
    return out.reshape(N, w2.shape[0], 1, 1)


def se_module_reference(x_nchw, w1, b1, w2, b2):
    """Pure-JAX reference matching the PyTorch forward (f32 math)."""
    pooled = jnp.mean(x_nchw.astype(jnp.float32), axis=(2, 3))           # (N, C)
    h = jnp.maximum(pooled @ w1.T.astype(jnp.float32) + b1.astype(jnp.float32), 0.0)
    y = jax.nn.sigmoid(h @ w2.T.astype(jnp.float32) + b2.astype(jnp.float32))
    return y.reshape(x_nchw.shape[0], w2.shape[0], 1, 1)


if __name__ == "__main__":
    key = jax.random.PRNGKey(0)
    kx, k1, k2, k3, k4, kx2, kx3 = jax.random.split(key, 7)

    # Small shapes consistent with the module (in_dim >= 16 so in_dim//16 >= 1).
    N, C, H, W = 2, 32, 8, 8
    in_dim, out_dim = C, 32
    hidden = in_dim // 16    # = 2

    x = jax.random.normal(kx, (N, C, H, W), dtype=jnp.float32)
    # PyTorch 1x1 Conv2d weight shapes, squeezed.
    w1 = jax.random.normal(k1, (hidden, in_dim), dtype=jnp.float32) * 0.1
    b1 = jax.random.normal(k2, (hidden,), dtype=jnp.float32) * 0.1
    w2 = jax.random.normal(k3, (out_dim, hidden), dtype=jnp.float32) * 0.1
    b2 = jax.random.normal(k4, (out_dim,), dtype=jnp.float32) * 0.1

    # Test 1: f32, lane-folded (C=32 -> fold 4 -> 128 lanes), single spatial tile.
    out = se_module_forward(x, w1, b1, w2, b2)
    jax.block_until_ready(out)
    ref = se_module_reference(x, w1, b1, w2, b2)
    assert out.shape == (N, out_dim, 1, 1), out.shape
    assert jnp.allclose(out, ref, atol=1e-5, rtol=1e-5), "mismatch vs reference (test 1)"

    # Test 2: f32, H*W=25 (no fold), forced tile_hw=8 -> 4 spatial blocks with
    # a masked partial tail (tail cost paid only on the last block).
    N2, H2, W2 = 3, 5, 5
    x2 = jax.random.normal(kx2, (N2, C, H2, W2), dtype=jnp.float32)
    out2 = se_module_forward(x2, w1, b1, w2, b2, tile_hw=8)
    jax.block_until_ready(out2)
    ref2 = se_module_reference(x2, w1, b1, w2, b2)
    assert out2.shape == (N2, out_dim, 1, 1), out2.shape
    assert jnp.allclose(out2, ref2, atol=1e-5, rtol=1e-5), "mismatch vs reference (test 2)"

    # Test 3: bf16 stream -> MXU pooling path, fold + multi-block + masked tail.
    N3, H3, W3 = 2, 6, 6                         # HW=36 -> fold 4 -> 9 rows
    x3 = jax.random.normal(kx3, (N3, C, H3, W3), dtype=jnp.float32).astype(jnp.bfloat16)
    out3 = se_module_forward(x3, w1, b1, w2, b2, tile_hw=8)
    jax.block_until_ready(out3)
    ref3 = se_module_reference(x3, w1, b1, w2, b2)
    assert out3.shape == (N3, out_dim, 1, 1), out3.shape
    assert out3.dtype == jnp.bfloat16, out3.dtype
    assert jnp.allclose(out3.astype(jnp.float32), ref3, atol=1e-2), "mismatch vs reference (test 3)"

    print("KERNEL_OK")
</pallas_src>

<mosaic_0001>
module attributes {stable_mosaic.version = 11 : i64} {
  func.func @_se_kernel(%arg0: i32, %arg1: i32, %arg2: memref<1x16x128xf32, #tpu.memory_space<vmem>>, %arg3: memref<32x2xf32, #tpu.memory_space<vmem>>, %arg4: memref<1x2xf32, #tpu.memory_space<vmem>>, %arg5: memref<2x32xf32, #tpu.memory_space<vmem>>, %arg6: memref<1x32xf32, #tpu.memory_space<vmem>>, %arg7: memref<1x1x32xf32, #tpu.memory_space<vmem>>, %arg8: memref<8x128xf32, #tpu.memory_space<vmem>>) attributes {dimension_semantics = [#tpu.dimension_semantics<parallel>, #tpu.dimension_semantics<arbitrary>], iteration_bounds = array<i64: 2, 1>, scalar_prefetch = 0 : i64, scratch_operands = 1 : i64, tpu.core_type = #tpu.core_type<tc>, window_params = [{transform_indices = @transform_0, window_bounds = array<i64: 1, 16, 128>}, {pipeline_mode = #tpu.pipeline_mode<synchronous>, transform_indices = @transform_1, window_bounds = array<i64: 32, 2>}, {pipeline_mode = #tpu.pipeline_mode<synchronous>, transform_indices = @transform_2, window_bounds = array<i64: 1, 2>}, {pipeline_mode = #tpu.pipeline_mode<synchronous>, transform_indices = @transform_3, window_bounds = array<i64: 2, 32>}, {pipeline_mode = #tpu.pipeline_mode<synchronous>, transform_indices = @transform_4, window_bounds = array<i64: 1, 32>}, {transform_indices = @transform_5, window_bounds = array<i64: 1, 1, 32>}]} {
    %c0_i32 = arith.constant 0 : i32
    %0 = arith.cmpi eq, %arg1, %c0_i32 : i32
    %1 = arith.extui %0 : i1 to i32
    %c0_i32_0 = arith.constant 0 : i32
    %2 = arith.cmpi ne, %1, %c0_i32_0 : i32
    scf.if %2 {
      %cst_9 = arith.constant 0.000000e+00 : f32
      %14 = vector.broadcast %cst_9 : f32 to vector<8x128xf32>
      %c0_10 = arith.constant 0 : index
      %c0_11 = arith.constant 0 : index
      %15 = vector.load %arg8[%c0_10, %c0_11] : memref<8x128xf32, #tpu.memory_space<vmem>>, vector<8x128xf32>
      tpu.vector_store %arg8[%c0_10, %c0_11], %14 {strides = array<i32>} : memref<8x128xf32, #tpu.memory_space<vmem>>, vector<8x128xf32>,
    } else {
    }
    %c0 = arith.constant 0 : index
    %c0_1 = arith.constant 0 : index
    %c0_2 = arith.constant 0 : index
    %3 = vector.load %arg2[%c0, %c0_1, %c0_2] : memref<1x16x128xf32, #tpu.memory_space<vmem>>, vector<1x16x128xf32>
    %4 = vector.shape_cast %3 : vector<1x16x128xf32> to vector<16x128xf32>
    %c0_3 = arith.constant 0 : index
    %c0_4 = arith.constant 0 : index
    %5 = vector.load %arg8[%c0_3, %c0_4] : memref<8x128xf32, #tpu.memory_space<vmem>>, vector<8x128xf32>
    %cst = arith.constant dense<0.000000e+00> : vector<128xf32>
    %6 = vector.multi_reduction <add>, %4, %cst [0] : vector<16x128xf32> to vector<128xf32>
    %7 = vector.shape_cast %6 : vector<128xf32> to vector<1x128xf32>
    %8 = vector.broadcast %7 : vector<1x128xf32> to vector<8x128xf32>
    %9 = arith.addf %5, %8 : vector<8x128xf32>
    %c0_5 = arith.constant 0 : index
    %c0_6 = arith.constant 0 : index
    %10 = vector.load %arg8[%c0_5, %c0_6] : memref<8x128xf32, #tpu.memory_space<vmem>>, vector<8x128xf32>
    tpu.vector_store %arg8[%c0_5, %c0_6], %9 {strides = array<i32>} : memref<8x128xf32, #tpu.memory_space<vmem>>, vector<8x128xf32>,
    %c0_i32_7 = arith.constant 0 : i32
    %11 = arith.cmpi eq, %arg1, %c0_i32_7 : i32
    %12 = arith.extui %11 : i1 to i32
    %c0_i32_8 = arith.constant 0 : i32
    %13 = arith.cmpi ne, %12, %c0_i32_8 : i32
    scf.if %13 {
      %c0_9 = arith.constant 0 : index
      %c0_10 = arith.constant 0 : index
      %14 = vector.load %arg8[%c0_9, %c0_10] : memref<8x128xf32, #tpu.memory_space<vmem>>, vector<1x128xf32>
      %15 = vector.extract_strided_slice %14 {offsets = [0, 0], sizes = [1, 32], strides = [1, 1]} : vector<1x128xf32> to vector<1x32xf32>
      %16 = vector.extract_strided_slice %14 {offsets = [0, 32], sizes = [1, 32], strides = [1, 1]} : vector<1x128xf32> to vector<1x32xf32>
      %17 = arith.addf %15, %16 : vector<1x32xf32>
      %18 = vector.extract_strided_slice %14 {offsets = [0, 64], sizes = [1, 32], strides = [1, 1]} : vector<1x128xf32> to vector<1x32xf32>
      %19 = arith.addf %17, %18 : vector<1x32xf32>
      %20 = vector.extract_strided_slice %14 {offsets = [0, 96], sizes = [1, 32], strides = [1, 1]} : vector<1x128xf32> to vector<1x32xf32>
      %21 = arith.addf %19, %20 : vector<1x32xf32>
      %cst_11 = arith.constant 1.562500e-02 : f32
      %22 = vector.broadcast %cst_11 : f32 to vector<1x32xf32>
      %23 = arith.mulf %21, %22 : vector<1x32xf32>
      %c0_12 = arith.constant 0 : index
      %c0_13 = arith.constant 0 : index
      %24 = vector.load %arg3[%c0_12, %c0_13] : memref<32x2xf32, #tpu.memory_space<vmem>>, vector<32x2xf32>
      %cst_14 = arith.constant dense<0.000000e+00> : vector<1x2xf32>
      %25 = tpu.matmul %23, %24, %cst_14 {dimension_numbers = #tpu.dot_dimension_numbers<[1], [0], [0], [1], [0, 0, 1, 1], [], []>} : vector<1x32xf32>, vector<32x2xf32>, vector<1x2xf32> -> vector<1x2xf32>
      %c0_15 = arith.constant 0 : index
      %c0_16 = arith.constant 0 : index
      %26 = vector.load %arg4[%c0_15, %c0_16] : memref<1x2xf32, #tpu.memory_space<vmem>>, vector<1x2xf32>
      %27 = arith.addf %25, %26 : vector<1x2xf32>
      %cst_17 = arith.constant 0.000000e+00 : f32
      %28 = vector.broadcast %cst_17 : f32 to vector<1x2xf32>
      %29 = arith.maximumf %27, %28 : vector<1x2xf32>
      %c0_18 = arith.constant 0 : index
      %c0_19 = arith.constant 0 : index
      %30 = vector.load %arg5[%c0_18, %c0_19] : memref<2x32xf32, #tpu.memory_space<vmem>>, vector<2x32xf32>
      %cst_20 = arith.constant dense<0.000000e+00> : vector<1x32xf32>
      %31 = tpu.matmul %29, %30, %cst_20 {dimension_numbers = #tpu.dot_dimension_numbers<[1], [0], [0], [1], [0, 0, 1, 1], [], []>} : vector<1x2xf32>, vector<2x32xf32>, vector<1x32xf32> -> vector<1x32xf32>
      %c0_21 = arith.constant 0 : index
      %c0_22 = arith.constant 0 : index
      %32 = vector.load %arg6[%c0_21, %c0_22] : memref<1x32xf32, #tpu.memory_space<vmem>>, vector<1x32xf32>
      %33 = arith.addf %31, %32 : vector<1x32xf32>
      %34 = arith.negf %33 : vector<1x32xf32>
      %35 = math.exp %34 : vector<1x32xf32>
      %cst_23 = arith.constant 1.000000e+00 : f32
      %36 = vector.broadcast %cst_23 : f32 to vector<1x32xf32>
      %37 = arith.addf %36, %35 : vector<1x32xf32>
      %38 = arith.divf %36, %37 : vector<1x32xf32>
      %c0_24 = arith.constant 0 : index
      %c0_25 = arith.constant 0 : index
      %c0_26 = arith.constant 0 : index
      %39 = vector.load %arg7[%c0_24, %c0_25, %c0_26] : memref<1x1x32xf32, #tpu.memory_space<vmem>>, vector<1x1x32xf32>
      %40 = vector.shape_cast %39 : vector<1x1x32xf32> to vector<1x32xf32>
      %41 = vector.shape_cast %38 : vector<1x32xf32> to vector<1x1x32xf32>
      tpu.vector_store %arg7[%c0_24, %c0_25, %c0_26], %41 {strides = array<i32>} : memref<1x1x32xf32, #tpu.memory_space<vmem>>, vector<1x1x32xf32>,
    } else {
    }
    return
  }
  func.func @transform_0(%arg0: i32, %arg1: i32) -> (i32, i32, i32) {
    %c0_i32 = arith.constant 0 : i32
    %c0_i32_0 = arith.constant 0 : i32
    return %arg0, %arg1, %c0_i32 : i32, i32, i32
  }
  func.func @transform_1(%arg0: i32, %arg1: i32) -> (i32, i32) {
    %c0_i32 = arith.constant 0 : i32
    %c0_i32_0 = arith.constant 0 : i32
    %c0_i32_1 = arith.constant 0 : i32
    return %c0_i32, %c0_i32_0 : i32, i32
  }
  func.func @transform_2(%arg0: i32, %arg1: i32) -> (i32, i32) {
    %c0_i32 = arith.constant 0 : i32
    %c0_i32_0 = arith.constant 0 : i32
    %c0_i32_1 = arith.constant 0 : i32
    return %c0_i32, %c0_i32_0 : i32, i32
  }
  func.func @transform_3(%arg0: i32, %arg1: i32) -> (i32, i32) {
    %c0_i32 = arith.constant 0 : i32
    %c0_i32_0 = arith.constant 0 : i32
    %c0_i32_1 = arith.constant 0 : i32
    return %c0_i32, %c0_i32_0 : i32, i32
  }
  func.func @transform_4(%arg0: i32, %arg1: i32) -> (i32, i32) {
    %c0_i32 = arith.constant 0 : i32
    %c0_i32_0 = arith.constant 0 : i32
    %c0_i32_1 = arith.constant 0 : i32
    return %c0_i32, %c0_i32_0 : i32, i32
  }
  func.func @transform_5(%arg0: i32, %arg1: i32) -> (i32, i32, i32) {
    %c0_i32 = arith.constant 0 : i32
    %c0_i32_0 = arith.constant 0 : i32
    %c0_i32_1 = arith.constant 0 : i32
    return %arg0, %c0_i32, %c0_i32_0 : i32, i32, i32
  }
}

</mosaic_0001>

<bundles_post_ra>
// kernel: tpu_custom_call.1
= control target key start
LH: loop header
LB: loop body
LE: loop exit
PB: predicated region body
PF: predicated region fallthrough
CT: control target
= control target key end

     0   :  { %10 = vsyncpa [#allocation4], 0  ;;  %s894_s0 = inlined_call_operand.vmem [shape: f32[2,16,128], index: 0, kind: input, shape index: {}]   ;;  %s895_s1 = inlined_call_operand.vmem [shape: f32[32,2], index: 1, kind: input, shape index: {}]   ;;  %s896_s2 = inlined_call_operand.vmem [shape: f32[1,2], index: 2, kind: input, shape index: {}]   ;;  %s897_s3 = inlined_call_operand.vmem [shape: f32[2,32], index: 3, kind: input, shape index: {}]   ;;  %s898_s4 = inlined_call_operand.vmem [shape: f32[1,32], index: 4, kind: input, shape index: {}]   ;;  %s899_s5 = inlined_call_operand.hbm [shape: f32[2,1,32], index: 5, kind: output, shape index: {}]  }
   0x1   :  { %12 = vsyncpa [#allocation4 + $0x1], 0  ;;  %s761_s18 = smov 0   ;;  %s763_s19 = smov 0  }
   0x2   :  { %s765_s20 = smov 0   ;;  %s767_s21 = smov 0  }
   0x3   :  { %s769_s22 = smov 0   ;;  %s771_s23 = smov 0  }
   0x4 LB: > { %s535_s24 = sadd.s32 4294967295, %s722_s23   ;;  %s536_s25 = sadd.s32 4294967294, %s722_s23   ;;  %s722_s23 = sphi %s771_s23, %s18_s23   ;;  %s718_s22 = sphi %s769_s22, %s906_s22   ;;  %s714_s21 = sphi %s767_s21, %s905_s21   ;;  %s710_s20 = sphi %s765_s20, %s904_s20   ;;  %s706_s19 = sphi %s763_s19, %s903_s19   ;;  %s702_s18 = sphi %s761_s18, %s902_s18  }
   0x5   : > { %s30_s26 = sadd.s32 1, %s718_s22  ;;  %s149_s27 = sadd.s32 1, %s710_s20 }
   0x6   : > { %p32_p0 = scmp.ge.s32.totalorder %s30_s26, 2  ;;  %p159_p1 = scmp.ne.s32.totalorder %s710_s20, %s706_s19 }
   0x7   : > { %p160_p2 = scmp.eq.s32.totalorder %s535_s24, 1  ;;  %p165_p3 = scmp.ne.s32.totalorder %s706_s19, %s702_s18 }
   0x8   : > { %s908_s26 = smov (%p32_p0, %s30_s26), 0  ;;  %p166_p5 = scmp.eq.s32.totalorder %s536_s25, 1 }
   0x9   : > { %p801_p4 = por %p160_p2, %p159_p1  ;;  %s146_s29 = ssub.s32 %s718_s22, %s908_s26 }
   0xa   : > { %p539_p6 = scmp.ge.s32.totalorder %s722_s23, 1  ;;  %p147_p7 = scmp.eq.s32.totalorder %s146_s29, 0 }
   0xb   : > { %p808_p8 = por %p166_p5, %p165_p3  ;;  %p209_p9 = scmp.lt.s32.totalorder %s722_s23, 3 }
   0xc   : > { %s814_s6 = scalar_select %p147_p7, %s710_s20, %s149_s27  }
   0xd   : > { %p210_p10 = pnand %p539_p6, %p209_p9 }
   0xe   : > { %p241_p11 = scmp.lt.s32.totalorder (!%p210_p10), %s714_s21, 1  ;;  %v724_v0 = vmov (!%p210_p10), 0.0   ;;  %v285_v9 = vld [vmem:[%s895_s1] sm:$0xff] (!%p210_p10)  ;;  %v286_v10 = vld [vmem:[%s895_s1 + $0x8] sm:$0xff] (!%p210_p10)  ;;  %v725_v12 = vmov (!%p210_p10), 0.0|0.0   ;;  %v287_v14 = vld [vmem:[%s895_s1 + $0x10] sm:$0xff] (!%p210_p10) }
   0xf   : > { %213 = sbr.rel (%p210_p10) target bundleno = 644 (0x284), region = 40  ;;  %568 = vmatprep.subr.mxu1 (!%p210_p10), %v724_v0  ;;  %573 = vmatprep.subr.bf16.mxu0 (!%p210_p10), %v725_v12  ;;  %v574_v13 = vpack.c.bf16 (!%p210_p10), %v286_v10, %v285_v9  ;;  %v288_v15 = vld [vmem:[%s895_s1 + $0x18] sm:$0xff] (!%p210_p10)  ;;  %vm726_vm0 = vmmov (!%p210_p10), 0   ;;  %s727_s27 = smov (!%p210_p10), 96   ;;  %vm290_vm1 = vcmask (!%p210_p10), 261120   ;;  %vm371_vm2 = vcmask (!%p210_p10), 1041408  }
  0x10   : > { %v577_v16 = vpack.c.bf16 (!%p210_p10), %v288_v15, %v287_v14  ;;  %565 = vmatprep.mubr.msk.f32.mxu0 (!%p210_p10), %vm726_vm0, %v724_v0  ;;  %570 = vmatprep.mubr.msk.f32.mxu1 (!%p210_p10), %vm726_vm0, %v724_v0  ;;  %s728_s29 = smov (!%p210_p10), 32   ;;  %v365_v25 = vld [vmem:[%s897_s3] sm:$0x3] (!%p210_p10)  ;;  %vm367_vm3 = vcmask (!%p210_p10), 15360   ;;  %s238_s14 = sand.u32 (!%p210_p10), 1, %s706_s19   ;;  %vm451_vm4 = vcmask (!%p210_p10), 253952  }
  0x11   : > { %575 = vmatpush3.bf16.msra.mxu0 (!%p210_p10), %v574_v13  ;;  %569 = vmatpush3.msk.msra.mxu1 (!%p210_p10), %vm371_vm2, %v365_v25  ;;  %v289_v26 = vld [vmem:[%s896_s2] sm:$0x1] (!%p210_p10)  ;;  %s546_s15 = sshll.u32 (!%p210_p10), %s714_s21, 4  ;;  %s239_s16 = scalar_lea.vmem (!%p210_p10), [#allocation3], %s238_s14 }
  0x12   : > { %576 = vmatprep.subr.bf16.mxu0 (!%p210_p10), %v725_v12  ;;  %v366_v31 = vld [vmem:[%s898_s4] sm:$0x1] (!%p210_p10)  ;;  %s466_s17 = sshll.u32 (!%p210_p10), %s239_s16, 4  ;;  %s849_s17 = int_to_ptr.vmem [resolvable:$true] %s466_s17 }
  0x15   : > { %578 = vmatpush3.bf16.msra.mxu0 (!%p210_p10), %v577_v16 }
  0x16   : > { %s242_s7 = scalar_select %p241_p11, %s714_s21, 1 }
  0x17   : > { %s730_s21 = smov [#allocation3]  }
  0x18   : > { %s549_s8 = sshll.u32 %s242_s7, 4  ;;  %s729_s7 = smov 64  }
  0x19   : > { %s248_s11 = scalar_lea.vmem %s894_s0, %s549_s8  ;;  %s648_s8 = sshll.u32 %s730_s21, 4  ;;  %s649_s8 = int_to_ptr.vmem [resolvable:$false] %s648_s8 }
  0x1a   : > { %v255_v1 = vld [vmem:[%s248_s11] sm:$0xff]  ;;  %v256_v2 = vld [vmem:[%s248_s11 + $0x8] sm:$0xff]  ;;  %s650_s9 = scalar_lea.vmem %s649_s8, 32  ;;  %p651_p1 = scmp.lt.s32.totalorder %s849_s17, %s649_s8 }
  0x1b   : > { %v258_v3 = vadd.f32 %v256_v2, %v255_v1 }
  0x1d   : > { %v259_v4 = vrot.slane %v258_v3, 4 }
  0x1f   : > { %v260_v5 = vadd.f32 %v259_v4, %v258_v3 }
  0x21   : > { %v261_v6 = vrot.slane %v260_v5, 2 }
  0x23   : > { %v262_v7 = vadd.f32 %v261_v6, %v260_v5 }
  0x25   : > { %v263_v8 = vrot.slane %v262_v7, 1 }
  0x27   : > { %v264_v11 = vadd.f32 %v263_v8, %v262_v7 }
  0x29   : > { %266 = vst [vmem:[#allocation2] sm:$0xff] %v264_v11 }
  0x30   : > { %v270_v17 = vld [vmem:[#allocation2] sm:$0x1] }
  0x31   : > { %272 = vrot.lane.b32.xlu0 %v270_v17, %s727_s27  ;;  %280 = vrot.lane.b32.xlu1 %v270_v17, %s728_s29  ;;  %s847_s27 = scalar_lea.hbm %s899_s5, %s546_s15  ;;  %s454_s29 = scalar_lea.sflag [#allocation4], %s238_s14 }
  0x35   : > { %276 = vrot.lane.b32.xlu0 %v270_v17, %s729_s7  ;;  %s644_s7 = scalar_lea.vmem %s849_s17, 16 }
  0x36   : > { %p645_p12 = scmp.ne.s32.totalorder %s849_s17, %s644_s7  ;;  %p652_p2 = scmp.lt.s32.totalorder %s650_s9, %s644_s7 }
  0x38   : > { %p646_p13 = pnand %p645_p12, %p801_p4  ;;  %p653_p3 = por %p652_p2, %p651_p1 }
  0x3a   : > { %p647_p0 = pneg %p646_p13 }
  0x3c   : > { %p654_p5 = pnand %p653_p3, %p647_p0 }
  0xa3   : > { %v273_v18 = vpop.permute.xlu0 %272  ;;  %v281_v21 = vpop.permute.xlu1 %280 }
  0xa4   : > { %v275_v19 = vadd.f32 %v273_v18, %v270_v17 }
  0xa7   : > { %v277_v20 = vpop.permute.xlu0 %276 }
  0xa8   : > { %v279_v22 = vadd.f32 %v277_v20, %v275_v19 }
  0xaa   : > { %v283_v23 = vadd.f32 %v281_v21, %v279_v22 }
  0xac   : > { %v284_v24 = vmul.f32 0.015625, %v283_v23 }
  0xae   : > { %566 = vmatmul.mubr.msk.f32.vlgmr.msra.gmra.mrb[0].mxu0 %vm290_vm1, %v284_v24 }
 0x181   : > { %v360_v27 = vpop.f32.mrb[0].mxu0 }
 0x182   : > { %v361_v28 = vadd.f32 %v360_v27, %v289_v26  ;;  %v567_v29 = vpop.f32.mrb[1].mxu0 }
 0x184   : > { %v364_v30 = vmax.f32 %v361_v28, 0.0 }
 0x186   : > { %571 = vmatmul.mubr.msk.f32.vlgmr.msra.gmra.mrb[0].mxu1 %vm367_vm3, %v364_v30 }
 0x259   : > { %v441_v32 = vpop.f32.mrb[0].mxu1 }
 0x25a   : > { %v442_v33 = vadd.f32 %v441_v32, %v366_v31  ;;  %v572_v34 = vpop.f32.mrb[1].mxu1 }
 0x25c   : > { %v545_v35 = vmul.f32 -1.442695, %v442_v33 }
 0x25e   : > { %640 = vpow2.f32 %v545_v35 }
 0x268   : > { %v641_v36 = vpop.eup %640 }
 0x269   : > { %v448_v37 = vadd.f32 1.0, %v641_v36 }
 0x26b   : > { %642 = vrcp.f32 %v448_v37 }
 0x275   : > { %v643_v38 = vpop.eup %642 }
 0x276   : > { %452 = vst.msk [vmem:[%s239_s16] sm:$0x1] %vm451_vm4, %v643_v38 }
 0x277   : > { %657 = shalt.err (!%p654_p5)
}
 0x278   : > { %s658_s10 = scalar_lea.hbm %s847_s27, 16  ;;  %s662_s13 = scalar_lea.hbm %s899_s5, 32 }
 0x279   : > { %p659_p6 = scmp.ne.s32.totalorder %s847_s27, %s658_s10  ;;  %p663_p10 = scmp.lt.u32.totalorder %s847_s27, %s899_s5 }
 0x27a   : > { %p664_p11 = scmp.lt.u32.totalorder %s662_s13, %s658_s10  ;;  %p666_p13 = scmp.lt.u32.totalorder %s658_s10, %s847_s27 }
 0x27b   : > { %p660_p7 = pnand %p659_p6, %p801_p4 }
 0x27c   : > { %p665_p12 = por %p664_p11, %p663_p10 }
 0x27d   : > { %p661_p9 = pneg %p660_p7 }
 0x27e   : > { %p667_p0 = por %p666_p13, %p665_p12 }
 0x280   : > { %p668_p1 = pnand %p667_p0, %p661_p9 }
 0x282   : > { %671 = shalt.err (!%p668_p1)
}
 0x283   : > { %579 = dma.vmem_to_hbm [thread:$0]  (%p801_p4), %s849_s17, 16, %s847_s27, %s454_s29  }
 0x284 PF: > { %p585_p2 = scmp.ge.s32.totalorder %s722_s23, 2  ;;  %s478_s16 = sand.u32 1, %s702_s18  }
 0x285   : > { %s479_s24 = scalar_lea.sflag [#allocation4], %s478_s16 }
 0x286   : > { %p582_p3 = pnand %p585_p2, %p808_p8 }
 0x288   : > { %697 = dma.done.wait (!%p582_p3), %s479_s24, 16  }
 0x289   : > { %699 = vsyncadd (!%p582_p3), %s479_s24, 4294967280  ;;  %s18_s23 = sadd.s32 1, %s722_s23   ;;  %s902_s18 = smov %s706_s19 }
 0x28a   : > { %p15_p5 = scmp.ge.s32.totalorder %s18_s23, 4   ;;  %s903_s19 = smov %s710_s20 }
 0x28b   : > { %s904_s20 = smov %s814_s6  ;;  %s905_s21 = smov %s718_s22 }
 0x28c   : > { %s906_s22 = smov %s908_s26  ;;  %17 = sbr.rel (!%p15_p5) target bundleno = 4 (0x4), region = 83 }
 0x293   :  { %483 = vsyncpa [#allocation4], 1 }
 0x294   :  { %485 = vsyncpa [#allocation4 + $0x1], 1 }

</bundles_post_ra>
